<compile_context>
chip_gen: v5e
topology: v5e:2x2
jax: 0.10.0
libtpu: 0.0.40
codegen_flags: <defaults>
</compile_context>

<pallas_src>
import jax
import jax.numpy as jnp
from jax.experimental import pallas as pl
from jax.experimental.pallas import tpu as pltpu

# Small, forward-consistent synthetic shapes.
B = 2             # batch (complexes)
N = 8             # nodes per complex (one sublane tile)
D = 32            # input node-feature dim
H = 32            # hidden dim
T = 4             # number of torsion angles
HEAD_OUT = 3 + 3 + T      # tr(3) | rot(3) | tor(T)
HEAD_PAD = 128            # lane-dense fused head output width
B_BLOCK = 8               # complexes per grid step -> 8 output sublanes, 64 node rows


def _score_model_kernel(x_ref, w1_ref, wh_ref, out_ref):
    """Hot path: (matmul+relu) -> sublane mean-pool -> fused lane-dense head matmul.

    x_ref:   (B_BLOCK*N, D+1)  node features with ones column (bias folded into w1)
    w1_ref:  (D+1, H)          encoder weight with bias row appended (VMEM-resident)
    wh_ref:  (H, 128)          fused head weight [w_tr | w_rot | w_tor | 0] * (1/N)
    out_ref: (B_BLOCK, 128)    lane-dense fused output (sliced in wrapper)
    """
    h = jnp.maximum(
        jnp.dot(x_ref[...], w1_ref[...], preferred_element_type=jnp.float32), 0.0)
    # Mean pool over nodes: N=8 rows per complex = exactly one sublane tile, so this
    # is a cheap XLU sublane reduce; the 1/N scale is folded into wh at prep time.
    pooled = jnp.sum(h.reshape(B_BLOCK, N, H), axis=1)
    out_ref[...] = jnp.dot(pooled, wh_ref[...],
                           preferred_element_type=jnp.float32).astype(out_ref.dtype)


def _xavier_normal(key, shape, dtype=jnp.float32):
    # matches nn.init.xavier_normal_ used in BaseModel._init for dim>1 params
    fan_in, fan_out = shape[0], shape[1]
    std = (2.0 / (fan_in + fan_out)) ** 0.5
    return std * jax.random.normal(key, shape, dtype)


def init_params(key):
    k1, k2, k3, k4 = jax.random.split(key, 4)
    return {
        "w1": _xavier_normal(k1, (D, H)),
        "b1": jnp.zeros((1, H), jnp.float32),   # 1-D params -> constant 0 (BaseModel._init)
        "w_tr": _xavier_normal(k2, (H, 3)),
        "w_rot": _xavier_normal(k3, (H, 3)),
        "w_tor": _xavier_normal(k4, (H, T)),
    }


def prepare_params(params):
    """One-time parameter prep (NOT per-call): fold bias into w1; fuse, pad and
    pre-scale the three head weights into a single lane-dense (H, 128) matrix."""
    w1_aug = jnp.concatenate([params["w1"], params["b1"]], axis=0)          # (D+1, H)
    w_heads = jnp.concatenate(
        [params["w_tr"], params["w_rot"], params["w_tor"]], axis=1)         # (H, HEAD_OUT)
    w_heads = jnp.pad(w_heads, ((0, 0), (0, HEAD_PAD - HEAD_OUT)))          # (H, 128)
    w_heads = w_heads * (1.0 / N)                                           # fold mean scale
    return {"w1_aug": w1_aug, "w_heads": w_heads}


@jax.jit
def score_model_forward(x, prepped):
    """ScoreModel.forward: returns dict with tr_pred, rot_pred, tor_pred."""
    b = x.shape[0]
    n_blocks = pl.cdiv(b, B_BLOCK)
    b_pad = n_blocks * B_BLOCK

    # --- layout plumbing in the wrapper, not in-kernel ---
    # Pad batch to a multiple of 8 sublanes, flatten nodes, append the ones
    # column that carries the folded bias (extra contraction column is free on MXU).
    x_p = jnp.pad(x, ((0, b_pad - b), (0, 0), (0, 0)))
    x2d = x_p.reshape(b_pad * N, D)
    x2d = jnp.concatenate([x2d, jnp.ones((b_pad * N, 1), x2d.dtype)], axis=1)

    rows = b_pad * N
    flops = 2 * rows * (D + 1) * H + 2 * b_pad * H * HEAD_PAD
    bytes_accessed = 4 * (rows * (D + 1) + (D + 1) * H + H * HEAD_PAD + b_pad * HEAD_PAD)

    out = pl.pallas_call(
        _score_model_kernel,
        out_shape=jax.ShapeDtypeStruct((b_pad, HEAD_PAD), jnp.float32),
        grid=(n_blocks,),
        in_specs=[
            pl.BlockSpec((B_BLOCK * N, D + 1), lambda i: (i, 0)),   # stream activations
            pl.BlockSpec((D + 1, H), lambda i: (0, 0)),             # weights: DMA'd once,
            pl.BlockSpec((H, HEAD_PAD), lambda i: (0, 0)),          # VMEM-resident
        ],
        out_specs=pl.BlockSpec((B_BLOCK, HEAD_PAD), lambda i: (i, 0)),
        compiler_params=pltpu.CompilerParams(dimension_semantics=("parallel",)),
        cost_estimate=pl.CostEstimate(flops=flops, transcendentals=0,
                                      bytes_accessed=bytes_accessed),
    )(x2d, prepped["w1_aug"], prepped["w_heads"])

    # Slice the fused lane-dense output into the three prediction heads.
    return {
        "tr_pred": out[:b, 0:3],
        "rot_pred": out[:b, 3:6],
        "tor_pred": out[:b, 6:6 + T],
    }


def _reference_forward(x, params):
    # pure-JAX reference for correctness check
    h = jnp.maximum(jnp.einsum("bnd,dh->bnh", x, params["w1"]) + params["b1"][0], 0.0)
    pooled = jnp.mean(h, axis=1)
    return {
        "tr_pred": pooled @ params["w_tr"],
        "rot_pred": pooled @ params["w_rot"],
        "tor_pred": pooled @ params["w_tor"],
    }


if __name__ == "__main__":
    key = jax.random.PRNGKey(0)
    k_x, k_p = jax.random.split(key)
    x = jax.random.normal(k_x, (B, N, D), jnp.float32)
    params = init_params(k_p)
    prepped = prepare_params(params)   # one-time prep, outside the jitted forward

    outputs = score_model_forward(x, prepped)
    jax.block_until_ready(outputs)

    ref = _reference_forward(x, params)
    for name in ("tr_pred", "rot_pred", "tor_pred"):
        assert outputs[name].shape == ref[name].shape, name
        assert jnp.allclose(outputs[name], ref[name], atol=1e-5, rtol=1e-5), name

    print("KERNEL_OK")
</pallas_src>

<mosaic_0001>
module attributes {stable_mosaic.version = 11 : i64} {
  func.func @_score_model_kernel(%arg0: i32, %arg1: memref<64x33xf32, #tpu.memory_space<vmem>>, %arg2: memref<33x32xf32, #tpu.memory_space<vmem>>, %arg3: memref<32x128xf32, #tpu.memory_space<vmem>>, %arg4: memref<8x128xf32, #tpu.memory_space<vmem>>) attributes {dimension_semantics = [#tpu.dimension_semantics<parallel>], iteration_bounds = array<i64: 1>, scalar_prefetch = 0 : i64, scratch_operands = 0 : i64, tpu.core_type = #tpu.core_type<tc>, window_params = [{transform_indices = @transform_0, window_bounds = array<i64: 64, 33>}, {pipeline_mode = #tpu.pipeline_mode<synchronous>, transform_indices = @transform_1, window_bounds = array<i64: 33, 32>}, {pipeline_mode = #tpu.pipeline_mode<synchronous>, transform_indices = @transform_2, window_bounds = array<i64: 32, 128>}, {transform_indices = @transform_3, window_bounds = array<i64: 8, 128>}]} {
    %c0 = arith.constant 0 : index
    %c0_0 = arith.constant 0 : index
    %0 = vector.load %arg1[%c0, %c0_0] : memref<64x33xf32, #tpu.memory_space<vmem>>, vector<64x33xf32>
    %c0_1 = arith.constant 0 : index
    %c0_2 = arith.constant 0 : index
    %1 = vector.load %arg2[%c0_1, %c0_2] : memref<33x32xf32, #tpu.memory_space<vmem>>, vector<33x32xf32>
    %cst = arith.constant dense<0.000000e+00> : vector<64x32xf32>
    %2 = tpu.matmul %0, %1, %cst {dimension_numbers = #tpu.dot_dimension_numbers<[1], [0], [0], [1], [0, 0, 1, 1], [], []>} : vector<64x33xf32>, vector<33x32xf32>, vector<64x32xf32> -> vector<64x32xf32>
    %cst_3 = arith.constant 0.000000e+00 : f32
    %3 = vector.broadcast %cst_3 : f32 to vector<64x32xf32>
    %4 = arith.maximumf %2, %3 : vector<64x32xf32>
    %5 = vector.shape_cast %4 : vector<64x32xf32> to vector<8x8x32xf32>
    %cst_4 = arith.constant dense<0.000000e+00> : vector<8x32xf32>
    %6 = vector.multi_reduction <add>, %5, %cst_4 [1] : vector<8x8x32xf32> to vector<8x32xf32>
    %c0_5 = arith.constant 0 : index
    %c0_6 = arith.constant 0 : index
    %7 = vector.load %arg3[%c0_5, %c0_6] : memref<32x128xf32, #tpu.memory_space<vmem>>, vector<32x128xf32>
    %cst_7 = arith.constant dense<0.000000e+00> : vector<8x128xf32>
    %8 = tpu.matmul %6, %7, %cst_7 {dimension_numbers = #tpu.dot_dimension_numbers<[1], [0], [0], [1], [0, 0, 1, 1], [], []>} : vector<8x32xf32>, vector<32x128xf32>, vector<8x128xf32> -> vector<8x128xf32>
    %c0_8 = arith.constant 0 : index
    %c0_9 = arith.constant 0 : index
    %9 = vector.load %arg4[%c0_8, %c0_9] : memref<8x128xf32, #tpu.memory_space<vmem>>, vector<8x128xf32>
    tpu.vector_store %arg4[%c0_8, %c0_9], %8 {strides = array<i32>} : memref<8x128xf32, #tpu.memory_space<vmem>>, vector<8x128xf32>,
    return
  }
  func.func @transform_0(%arg0: i32) -> (i32, i32) {
    %c0_i32 = arith.constant 0 : i32
    %c0_i32_0 = arith.constant 0 : i32
    return %arg0, %c0_i32 : i32, i32
  }
  func.func @transform_1(%arg0: i32) -> (i32, i32) {
    %c0_i32 = arith.constant 0 : i32
    %c0_i32_0 = arith.constant 0 : i32
    %c0_i32_1 = arith.constant 0 : i32
    return %c0_i32, %c0_i32_0 : i32, i32
  }
  func.func @transform_2(%arg0: i32) -> (i32, i32) {
    %c0_i32 = arith.constant 0 : i32
    %c0_i32_0 = arith.constant 0 : i32
    %c0_i32_1 = arith.constant 0 : i32
    return %c0_i32, %c0_i32_0 : i32, i32
  }
  func.func @transform_3(%arg0: i32) -> (i32, i32) {
    %c0_i32 = arith.constant 0 : i32
    %c0_i32_0 = arith.constant 0 : i32
    return %arg0, %c0_i32 : i32, i32
  }
}

</mosaic_0001>

<bundles_post_ra>
// kernel: score_model_forward.1
= control target key start
LH: loop header
LB: loop body
LE: loop exit
PB: predicated region body
PF: predicated region fallthrough
CT: control target
= control target key end

     0   :  { %vm52_vm0 = vcmask 1040384   ;;  %vm27_vm1 = vcmask 269312   ;;  %vm105_vm2 = vcmask 261120   ;;  %vm174_vm3 = vcmask 1041409   ;;  %s326_s1 = inlined_call_operand.vmem [shape: f32[33,32], index: 1, kind: input, shape index: {}]   ;;  %s327_s0 = inlined_call_operand.vmem [shape: f32[64,33], index: 0, kind: input, shape index: {}]   ;;  %s328_s2 = inlined_call_operand.vmem [shape: f32[32,128], index: 2, kind: input, shape index: {}]   ;;  %s329_s3 = inlined_call_operand.vmem [shape: f32[8,128], index: 3, kind: output, shape index: {}]  }
   0x1   :  { %v26_v0 = vld [vmem:[%s326_s1 + $0x20] sm:$0x1]  ;;  %v25_v1 = vld [vmem:[%s326_s1 + $0x18] sm:$0xff]  ;;  %v24_v2 = vld [vmem:[%s326_s1 + $0x10] sm:$0xff]  ;;  %vm176_vm4 = vcmask 1042434   ;;  %vm178_vm5 = vcmask 1043459  }
   0x2   :  { %215 = vmatpush.msk.msra.mxu0 %vm52_vm0, %v26_v0  ;;  %225 = vmatpush.msk.msra.mxu2 %vm52_vm0, %v26_v0  ;;  %v23_v3 = vld [vmem:[%s326_s1 + $0x8] sm:$0xff]  ;;  %v22_v4 = vld [vmem:[%s326_s1] sm:$0xff]  ;;  %v16_v6 = vld [vmem:[%s327_s0 + $0x10] sm:$0xff]  ;;  %vm180_vm6 = vcmask 1044484   ;;  %vm182_vm7 = vcmask 1045509   ;;  %vm184_vm8 = vcmask 1046534  }
   0x3   :  { %226 = vmatpush.msk.msra.mxu3 %vm52_vm0, %v26_v0  ;;  %v14_v5 = vld [vmem:[%s327_s0] sm:$0xff]  ;;  %v19_v7 = vld [vmem:[%s327_s0 + $0x28] sm:$0xff]  ;;  %v17_v9 = vld [vmem:[%s327_s0 + $0x18] sm:$0xff]  ;;  %vm186_vm9 = vcmask 1047559  }
   0x4   :  { %68 = vmatpush.msra.mxu0 %v25_v1  ;;  %227 = vmatpush.msra.mxu2 %v25_v1  ;;  %v15_v8 = vld [vmem:[%s327_s0 + $0x8] sm:$0xff]  ;;  %v20_v10 = vld [vmem:[%s327_s0 + $0x30] sm:$0xff]  ;;  %v18_v11 = vld [vmem:[%s327_s0 + $0x20] sm:$0xff] }
   0x5   :  { %228 = vmatpush.msra.mxu3 %v25_v1  ;;  %v21_v12 = vld [vmem:[%s327_s0 + $0x38] sm:$0xff]  ;;  %v164_v16 = vld [vmem:[%s328_s2 + $0x10] sm:$0xff]  ;;  %v163_v17 = vld [vmem:[%s328_s2 + $0x8] sm:$0xff] }
   0x6   :  { %69 = vmatpush.msra.mxu0 %v24_v2  ;;  %229 = vmatpush.msra.mxu2 %v24_v2  ;;  %v165_v14 = vld [vmem:[%s328_s2 + $0x18] sm:$0xff]  ;;  %v162_v20 = vld [vmem:[%s328_s2] sm:$0xff] }
   0x7   :  { %230 = vmatpush.msra.mxu3 %v24_v2  ;;  %202 = vmatpush.msra.mxu1 %v165_v14 }
   0x8   :  { %70 = vmatpush.msra.mxu0 %v23_v3  ;;  %231 = vmatpush.msra.mxu2 %v23_v3 }
   0x9   :  { %232 = vmatpush.msra.mxu3 %v23_v3  ;;  %203 = vmatpush.msra.mxu1 %v164_v16 }
   0xa   :  { %71 = vmatpush.msra.mxu0 %v22_v4  ;;  %233 = vmatpush.msra.mxu2 %v22_v4 }
   0xb   :  { %234 = vmatpush.msra.mxu3 %v22_v4  ;;  %216 = vmatmul.msk.f32.vlgmr.msra.gmra.mxu0 %vm27_vm1, %v14_v5 }
   0xc   :  { %218 = vmatmul.msk.f32.vlgmr.msra.gmra.mxu2 %vm27_vm1, %v16_v6  ;;  %221 = vmatmul.msk.f32.vlgmr.msra.gmra.mxu3 %vm27_vm1, %v19_v7 }
   0xd   :  { %204 = vmatpush.msra.mxu1 %v163_v17 }
   0xf   :  { %205 = vmatpush.msra.mxu1 %v162_v20 }
  0x13   :  { %217 = vmatmul.msk.f32.gmra.mxu0 %vm27_vm1, %v15_v8 }
  0x14   :  { %219 = vmatmul.msk.f32.gmra.mxu2 %vm27_vm1, %v17_v9  ;;  %222 = vmatmul.msk.f32.gmra.mxu3 %vm27_vm1, %v20_v10 }
  0x1c   :  { %220 = vmatmul.msk.f32.gmra.mxu2 %vm27_vm1, %v18_v11  ;;  %223 = vmatmul.msk.f32.gmra.mxu3 %vm27_vm1, %v21_v12 }
  0x88   :  { %v73_v13 = vpop.f32.mrf.mxu0 }
  0x89   :  { %v97_v15 = vmax.f32 %v73_v13, 0.0 }
  0x8b   :  { %v106_v23 = vsel %vm105_vm2, %v97_v15, 0.0 }
  0x8c   :  { %v107_v27 = vrot.slane %v106_v23, 4 }
  0x8e   :  { %v108_v35 = vadd.f32 %v107_v27, %v106_v23 }
  0x8f   :  { %v79_v18 = vpop.f32.mrf.mxu2  ;;  %v88_v19 = vpop.f32.mrf.mxu3 }
  0x90   :  { %v99_v21 = vmax.f32 %v79_v18, 0.0  ;;  %v76_v22 = vpop.f32.mrf.mxu0  ;;  %v102_v25 = vmax.f32 %v88_v19, 0.0  ;;  %v109_v45 = vrot.slane %v108_v35, 2 }
  0x91   :  { %v98_v24 = vmax.f32 %v76_v22, 0.0 }
  0x92   :  { %v120_v28 = vsel %vm105_vm2, %v99_v21, 0.0  ;;  %v141_v30 = vsel %vm105_vm2, %v102_v25, 0.0  ;;  %v110_v54 = vadd.f32 %v109_v45, %v108_v35 }
  0x93   :  { %v113_v26 = vsel %vm105_vm2, %v98_v24, 0.0  ;;  %v121_v32 = vrot.slane %v120_v28, 4  ;;  %v142_v38 = vrot.slane %v141_v30, 4 }
  0x94   :  { %v114_v29 = vrot.slane %v113_v26, 4  ;;  %v111_v2 = vrot.slane %v110_v54, 1 }
  0x95   :  { %v122_v42 = vadd.f32 %v121_v32, %v120_v28  ;;  %v143_v46 = vadd.f32 %v142_v38, %v141_v30 }
  0x96   :  { %v115_v31 = vadd.f32 %v114_v29, %v113_v26  ;;  %v112_v12 = vadd.f32 %v111_v2, %v110_v54 }
  0x97   :  { %v82_v33 = vpop.f32.mrf.mxu2  ;;  %v91_v34 = vpop.f32.mrf.mxu3  ;;  %v123_v49 = vrot.slane %v122_v42, 2  ;;  %v144_v57 = vrot.slane %v143_v46, 2 }
  0x98   :  { %v100_v36 = vmax.f32 %v82_v33, 0.0  ;;  %v103_v37 = vmax.f32 %v91_v34, 0.0  ;;  %v116_v39 = vrot.slane %v115_v31, 2 }
  0x99   :  { %v124_v62 = vadd.f32 %v123_v49, %v122_v42  ;;  %v145_v5 = vadd.f32 %v144_v57, %v143_v46 }
  0x9a   :  { %v127_v40 = vsel %vm105_vm2, %v100_v36, 0.0  ;;  %v148_v41 = vsel %vm105_vm2, %v103_v37, 0.0  ;;  %v117_v48 = vadd.f32 %v116_v39, %v115_v31 }
  0x9b   :  { %v128_v43 = vrot.slane %v127_v40, 4  ;;  %v149_v44 = vrot.slane %v148_v41, 4  ;;  %v125_v8 = vrot.slane %v124_v62, 1  ;;  %v146_v15 = vrot.slane %v145_v5, 1 }
  0x9c   :  { %v118_v58 = vrot.slane %v117_v48, 1 }
  0x9d   :  { %v129_v47 = vadd.f32 %v128_v43, %v127_v40  ;;  %v150_v51 = vadd.f32 %v149_v44, %v148_v41  ;;  %v126_v18 = vadd.f32 %v125_v8, %v124_v62  ;;  %v147_v24 = vadd.f32 %v146_v15, %v145_v5 }
  0x9e   :  { %v119_v6 = vadd.f32 %v118_v58, %v117_v48 }
  0x9f   :  { %v130_v50 = vrot.slane %v129_v47, 2  ;;  %v85_v52 = vpop.f32.mrf.mxu2  ;;  %v94_v53 = vpop.f32.mrf.mxu3  ;;  %v151_v63 = vrot.slane %v150_v51, 2 }
  0xa0   :  { %v101_v55 = vmax.f32 %v85_v52, 0.0  ;;  %v104_v56 = vmax.f32 %v94_v53, 0.0  ;;  %v175_v16 = vsel %vm174_vm3, %v119_v6, %v112_v12 }
  0xa1   :  { %v131_v59 = vadd.f32 %v130_v50, %v129_v47  ;;  %v152_v9 = vadd.f32 %v151_v63, %v150_v51  ;;  %v177_v23 = vsel %vm176_vm4, %v126_v18, %v175_v16 }
  0xa2   :  { %v134_v60 = vsel %vm105_vm2, %v101_v55, 0.0  ;;  %v155_v61 = vsel %vm105_vm2, %v104_v56, 0.0 }
  0xa3   :  { %v135_v0 = vrot.slane %v134_v60, 4  ;;  %v156_v1 = vrot.slane %v155_v61, 4  ;;  %v132_v7 = vrot.slane %v131_v59, 1  ;;  %v153_v19 = vrot.slane %v152_v9, 1 }
  0xa5   :  { %v136_v3 = vadd.f32 %v135_v0, %v134_v60  ;;  %v157_v4 = vadd.f32 %v156_v1, %v155_v61  ;;  %v133_v17 = vadd.f32 %v132_v7, %v131_v59  ;;  %v154_v26 = vadd.f32 %v153_v19, %v152_v9 }
  0xa7   :  { %v137_v10 = vrot.slane %v136_v3, 2  ;;  %v158_v11 = vrot.slane %v157_v4, 2  ;;  %v179_v25 = vsel %vm178_vm5, %v133_v17, %v177_v23 }
  0xa9   :  { %v138_v13 = vadd.f32 %v137_v10, %v136_v3  ;;  %v159_v14 = vadd.f32 %v158_v11, %v157_v4 }
  0xab   :  { %v139_v20 = vrot.slane %v138_v13, 1  ;;  %v160_v21 = vrot.slane %v159_v14, 1 }
  0xad   :  { %v140_v22 = vadd.f32 %v139_v20, %v138_v13  ;;  %v161_v28 = vadd.f32 %v160_v21, %v159_v14 }
  0xaf   :  { %v181_v27 = vsel %vm180_vm6, %v140_v22, %v179_v25 }
  0xb0   :  { %v183_v29 = vsel %vm182_vm7, %v147_v24, %v181_v27 }
  0xb1   :  { %v185_v30 = vsel %vm184_vm8, %v154_v26, %v183_v29 }
  0xb2   :  { %v187_v31 = vsel %vm186_vm9, %v161_v28, %v185_v30 }
  0xb3   :  { %224 = vmatmul.msk.f32.vlgmr.msra.gmra.mxu1 %vm105_vm2, %v187_v31 }
 0x130   :  { %v207_v32 = vpop.f32.mrf.mxu1 }
 0x131   :  { %210 = vst [vmem:[%s329_s3] sm:$0xff] %v207_v32 }

</bundles_post_ra>
